<compile_context>
chip_gen: v6e
topology: v6e:2x2x1
jax: 0.10.0
libtpu: 0.0.40
codegen_flags: <defaults>
</compile_context>

<pallas_src>
import functools

import jax
import jax.numpy as jnp
from jax.experimental import pallas as pl
from jax.experimental.pallas import tpu as pltpu


def _embedding_gather_kernel(ids_ref, tok_hbm, pos_ref, out_ref, rows, sems,
                             *, seq_len, tile_s):
    # ids_ref : (B*S,) int32 in SMEM (scalar prefetch)  -- flattened token ids
    # tok_hbm : (V, D) float32, memory_space=ANY (stays in HBM, gathered via DMA)
    # pos_ref : (tile_s, D) float32 VMEM -- positional-encoding tile (auto-pipelined)
    # out_ref : (tile_s, D) float32 VMEM -- output tile (leading batch dim squeezed)
    # rows    : (tile_s, D) float32 VMEM scratch -- gathered embedding rows
    # sems    : (tile_s,) DMA semaphores
    b = pl.program_id(0)
    j = pl.program_id(1)
    base = b * seq_len + j * tile_s

    # Issue all row-gather DMAs for this tile (concurrent, one semaphore per row).
    @pl.loop(0, tile_s)
    def _issue(i):
        tid = ids_ref[base + i]
        pltpu.make_async_copy(tok_hbm.at[tid], rows.at[i], sems.at[i]).start()

    # Wait for all gathers to land.
    @pl.loop(0, tile_s)
    def _wait(i):
        pltpu.make_async_copy(tok_hbm.at[0], rows.at[i], sems.at[i]).wait()

    # Fused epilogue: token embedding + positional encoding.
    out_ref[...] = (rows[...] + pos_ref[...]).astype(out_ref.dtype)


def _pick_tile_s(seq_len):
    # Largest "nice" tile of tokens per grid step that divides S (keeps sublane-aligned
    # tiles for realistic S; falls back to S itself for tiny sequences).
    for cand in (128, 64, 32, 16, 8):
        if seq_len % cand == 0:
            return cand
    return seq_len


def transformer_embedding(ids, tok_table, pos_enc_full, drop_prob=0.0):
    """ids: [B, S] int; tok_table: [V, D] f32; pos_enc_full: [max_len, D] f32."""
    B, S = ids.shape
    V, D = tok_table.shape
    pos_enc = pos_enc_full[:S, :]          # PositionalEncoding.forward slices to seq_len
    tile_s = _pick_tile_s(S)
    grid = (B, S // tile_s)

    kernel = functools.partial(_embedding_gather_kernel, seq_len=S, tile_s=tile_s)
    ids_flat = ids.reshape(B * S).astype(jnp.int32)

    out = pl.pallas_call(
        kernel,
        out_shape=jax.ShapeDtypeStruct((B, S, D), jnp.float32),
        grid_spec=pltpu.PrefetchScalarGridSpec(
            num_scalar_prefetch=1,                      # ids -> SMEM
            grid=grid,
            in_specs=[
                pl.BlockSpec(memory_space=pl.ANY),      # embedding table stays in HBM
                pl.BlockSpec((tile_s, D), lambda b, j, ids: (j, 0)),   # pos enc tile
            ],
            # Leading batch dim squeezed: kernel sees a (tile_s, D) output tile.
            out_specs=pl.BlockSpec((None, tile_s, D), lambda b, j, ids: (b, j, 0)),
            scratch_shapes=[
                pltpu.VMEM((tile_s, D), jnp.float32),   # gathered rows
                pltpu.SemaphoreType.DMA((tile_s,)),     # one DMA sem per row
            ],
        ),
        compiler_params=pltpu.CompilerParams(
            dimension_semantics=("parallel", "parallel")),
    )(ids_flat, tok_table, pos_enc)

    # Dropout: eval-mode (identity). Training mode would mask + scale by 1/(1-p).
    return out


def make_sinusoid_encoding(max_len, d_model):
    pos = jnp.arange(max_len, dtype=jnp.float32)[:, None]               # (max_len, 1)
    two_i = jnp.arange(0, d_model, 2, dtype=jnp.float32)[None, :]       # (1, d_model//2)
    angle = pos / jnp.power(10000.0, two_i / d_model)                   # (max_len, d_model//2)
    enc = jnp.zeros((max_len, d_model), dtype=jnp.float32)
    enc = enc.at[:, 0::2].set(jnp.sin(angle))
    enc = enc.at[:, 1::2].set(jnp.cos(angle))
    return enc


if __name__ == "__main__":
    # Small shapes consistent with the module's forward.
    vocab_size, d_model, max_len = 64, 32, 16
    batch, seq_len = 2, 8
    padding_idx = 1  # TokenEmbedding uses nn.Embedding(..., padding_idx=1)

    key = jax.random.PRNGKey(0)
    k_tab, k_ids = jax.random.split(key)

    # Deterministic parameter init (nn.Embedding default: N(0, 1)); zero the padding row.
    tok_table = jax.random.normal(k_tab, (vocab_size, d_model), dtype=jnp.float32)
    tok_table = tok_table.at[padding_idx, :].set(0.0)

    pos_enc_full = make_sinusoid_encoding(max_len, d_model)

    ids = jax.random.randint(k_ids, (batch, seq_len), 0, vocab_size, dtype=jnp.int32)

    out = transformer_embedding(ids, tok_table, pos_enc_full, drop_prob=0.1)
    out = jax.block_until_ready(out)

    # Pure-JAX reference check (gather is bit-exact).
    ref = tok_table[ids] + pos_enc_full[:seq_len][None, :, :]
    assert out.shape == (batch, seq_len, d_model)
    assert jnp.allclose(out, ref, atol=1e-6), "mismatch vs reference"

    print("KERNEL_OK")
</pallas_src>

<mosaic_0001>
module attributes {stable_mosaic.version = 11 : i64} {
  func.func @_embedding_gather_kernel(%arg0: i32, %arg1: i32, %arg2: memref<16xi32, #tpu.memory_space<smem>>, %arg3: memref<64x32xf32, #tpu.memory_space<any>>, %arg4: memref<8x32xf32, #tpu.memory_space<vmem>>, %arg5: memref<1x8x32xf32, #tpu.memory_space<vmem>>, %arg6: memref<8x32xf32, #tpu.memory_space<vmem>>, %arg7: memref<8x!tpu.dma_semaphore, #tpu.memory_space<semaphore_mem>>) attributes {dimension_semantics = [#tpu.dimension_semantics<parallel>, #tpu.dimension_semantics<parallel>], iteration_bounds = array<i64: 2, 1>, scalar_prefetch = 1 : i64, scratch_operands = 2 : i64, tpu.core_type = #tpu.core_type<tc>, window_params = [{}, {transform_indices = @transform_1, window_bounds = array<i64: 8, 32>}, {transform_indices = @transform_2, window_bounds = array<i64: 1, 8, 32>}]} {
    %c8_i32 = arith.constant 8 : i32
    %0 = arith.muli %arg0, %c8_i32 : i32
    %c8_i32_0 = arith.constant 8 : i32
    %1 = arith.muli %arg1, %c8_i32_0 : i32
    %2 = arith.addi %0, %1 : i32
    %c0_i32 = arith.constant 0 : i32
    %c8_i32_1 = arith.constant 8 : i32
    %3 = arith.addi %c0_i32, %c8_i32_1 : i32
    %c1_i32 = arith.constant 1 : i32
    scf.for %arg8 = %c0_i32 to %3 step %c1_i32  : i32 {
      %c1_i32_13 = arith.constant 1 : i32
      %11 = arith.muli %arg8, %c1_i32_13 : i32
      %c0_i32_14 = arith.constant 0 : i32
      %12 = arith.addi %c0_i32_14, %11 : i32
      %13 = arith.addi %2, %12 : i32
      %14 = arith.index_cast %13 : i32 to index
      %15 = memref.load %arg2[%14] : memref<16xi32, #tpu.memory_space<smem>>
      %c0_i32_15 = arith.constant 0 : i32
      %16 = tpu.memref_slice %arg3[%15, %c0_i32_15] : memref<64x32xf32, #tpu.memory_space<any>> -> memref<1x32xf32, #tpu.memory_space<any>>
      %17 = tpu.memref_squeeze %16 : memref<1x32xf32, #tpu.memory_space<any>> -> memref<32xf32, #tpu.memory_space<any>>
      %c0_i32_16 = arith.constant 0 : i32
      %18 = tpu.memref_slice %arg6[%12, %c0_i32_16] : memref<8x32xf32, #tpu.memory_space<vmem>> -> memref<1x32xf32, #tpu.memory_space<vmem>>
      %19 = tpu.memref_squeeze %18 : memref<1x32xf32, #tpu.memory_space<vmem>> -> memref<32xf32, #tpu.memory_space<vmem>>
      %20 = tpu.memref_slice %arg7[%12] : memref<8x!tpu.dma_semaphore, #tpu.memory_space<semaphore_mem>> -> memref<1x!tpu.dma_semaphore, #tpu.memory_space<semaphore_mem>>
      %21 = tpu.memref_squeeze %20 : memref<1x!tpu.dma_semaphore, #tpu.memory_space<semaphore_mem>> -> memref<!tpu.dma_semaphore, #tpu.memory_space<semaphore_mem>>
      tpu.enqueue_dma source(%17 : memref<32xf32, #tpu.memory_space<any>>) target(%19 : memref<32xf32, #tpu.memory_space<vmem>>) target_semaphore(%21 : memref<!tpu.dma_semaphore, #tpu.memory_space<semaphore_mem>>)
    }
    %c8_i32_2 = arith.constant 8 : i32
    %c0_i32_3 = arith.constant 0 : i32
    %c8_i32_4 = arith.constant 8 : i32
    %4 = arith.addi %c0_i32_3, %c8_i32_4 : i32
    %c1_i32_5 = arith.constant 1 : i32
    scf.for %arg8 = %c0_i32_3 to %4 step %c1_i32_5  : i32 {
      %c1_i32_13 = arith.constant 1 : i32
      %11 = arith.muli %arg8, %c1_i32_13 : i32
      %c0_i32_14 = arith.constant 0 : i32
      %12 = arith.addi %c0_i32_14, %11 : i32
      %c0_i32_15 = arith.constant 0 : i32
      %c0_i32_16 = arith.constant 0 : i32
      %13 = tpu.memref_slice %arg3[%c0_i32_15, %c0_i32_16] : memref<64x32xf32, #tpu.memory_space<any>> -> memref<1x32xf32, #tpu.memory_space<any>>
      %14 = tpu.memref_squeeze %13 : memref<1x32xf32, #tpu.memory_space<any>> -> memref<32xf32, #tpu.memory_space<any>>
      %c0_i32_17 = arith.constant 0 : i32
      %15 = tpu.memref_slice %arg6[%12, %c0_i32_17] : memref<8x32xf32, #tpu.memory_space<vmem>> -> memref<1x32xf32, #tpu.memory_space<vmem>>
      %16 = tpu.memref_squeeze %15 : memref<1x32xf32, #tpu.memory_space<vmem>> -> memref<32xf32, #tpu.memory_space<vmem>>
      %17 = tpu.memref_slice %arg7[%12] : memref<8x!tpu.dma_semaphore, #tpu.memory_space<semaphore_mem>> -> memref<1x!tpu.dma_semaphore, #tpu.memory_space<semaphore_mem>>
      %18 = tpu.memref_squeeze %17 : memref<1x!tpu.dma_semaphore, #tpu.memory_space<semaphore_mem>> -> memref<!tpu.dma_semaphore, #tpu.memory_space<semaphore_mem>>
      tpu.wait_dma2 semaphore(%18 : memref<!tpu.dma_semaphore, #tpu.memory_space<semaphore_mem>>) src(%14 : memref<32xf32, #tpu.memory_space<any>>) dst(%16 : memref<32xf32, #tpu.memory_space<vmem>>)
    }
    %c8_i32_6 = arith.constant 8 : i32
    %c0 = arith.constant 0 : index
    %c0_7 = arith.constant 0 : index
    %5 = vector.load %arg6[%c0, %c0_7] : memref<8x32xf32, #tpu.memory_space<vmem>>, vector<8x32xf32>
    %c0_8 = arith.constant 0 : index
    %c0_9 = arith.constant 0 : index
    %6 = vector.load %arg4[%c0_8, %c0_9] : memref<8x32xf32, #tpu.memory_space<vmem>>, vector<8x32xf32>
    %7 = arith.addf %5, %6 : vector<8x32xf32>
    %c0_10 = arith.constant 0 : index
    %c0_11 = arith.constant 0 : index
    %c0_12 = arith.constant 0 : index
    %8 = vector.load %arg5[%c0_10, %c0_11, %c0_12] : memref<1x8x32xf32, #tpu.memory_space<vmem>>, vector<1x8x32xf32>
    %9 = vector.shape_cast %8 : vector<1x8x32xf32> to vector<8x32xf32>
    %10 = vector.shape_cast %7 : vector<8x32xf32> to vector<1x8x32xf32>
    tpu.vector_store %arg5[%c0_10, %c0_11, %c0_12], %10 {strides = array<i32>} : memref<1x8x32xf32, #tpu.memory_space<vmem>>, vector<1x8x32xf32>,
    return
  }
  func.func @transform_1(%arg0: i32, %arg1: i32, %arg2: memref<16xi32, #tpu.memory_space<smem>>) -> (i32, i32) {
    %c0_i32 = arith.constant 0 : i32
    %c0_i32_0 = arith.constant 0 : i32
    return %arg1, %c0_i32 : i32, i32
  }
  func.func @transform_2(%arg0: i32, %arg1: i32, %arg2: memref<16xi32, #tpu.memory_space<smem>>) -> (i32, i32, i32) {
    %c0_i32 = arith.constant 0 : i32
    %c0_i32_0 = arith.constant 0 : i32
    return %arg0, %arg1, %c0_i32 : i32, i32, i32
  }
}

</mosaic_0001>

<bundles_post_ra>
// kernel: tpu_custom_call.1
= control target key start
LH: loop header
LB: loop body
LE: loop exit
PB: predicated region body
PF: predicated region fallthrough
CT: control target
= control target key end

     0   :  { %s717_s0 = inlined_call_operand.vmem [shape: s32[16], index: 0, kind: input, shape index: {}]   ;;  %s718_s1 = inlined_call_operand.vmem [shape: f32[64,32], index: 1, kind: input, shape index: {}]   ;;  %s719_s2 = inlined_call_operand.vmem [shape: f32[8,32], index: 2, kind: input, shape index: {}]   ;;  %s720_s3 = inlined_call_operand.hbm [shape: f32[2,8,32], index: 3, kind: output, shape index: {}]  }
   0x1   :  { %s8_s14 = sshll.u32 %s717_s0, 4  ;;  %s9_s14 = int_to_ptr.vmem [resolvable:$true] %s8_s14 }
   0x2   :  { %s464_s15 = scalar_lea.vmem %s9_s14, 16  ;;  %p469_p1 = scmp.lt.s32.totalorder %s9_s14, %s9_s14 }
   0x3   :  { %p465_p0 = scmp.ne.s32.totalorder %s9_s14, %s464_s15  ;;  %p470_p2 = scmp.lt.s32.totalorder %s464_s15, %s464_s15 }
   0x5   :  { %p471_p3 = por %p470_p2, %p469_p1 }
   0x7   :  { %p472_p4 = pnand %p471_p3, %p465_p0 }
   0x9   :  { %475 = shalt.err (!%p472_p4)  }
   0xa   :  { %s574_s16 = smov [#allocation5]  }
   0xb   :  { %11 = dma.vmem_to_smem %s9_s14, 16, %s574_s16, [#allocation4] }
   0xc   :  { %534 = dma.done.wait [#allocation4], 16 }
   0xd   :  { %535 = vsyncadd [#allocation4], 4294967280 }
   0xe   :  { %13 = sfence }
   0xf   :  { %14 = vsyncpa [#allocation7], 0 }
  0x10   :  { %16 = vsyncpa [#allocation7 + $0x1], 0  ;;  %s599_s17 = smov 0   ;;  %s601_s18 = smov 0  }
  0x11   :  { %s603_s0 = smov 0   ;;  %s605_s19 = smov 0  }
  0x12   :  { %s607_s20 = smov 0   ;;  %s609_s21 = smov 0  }
  0x13 LB: > { %s373_s22 = sadd.s32 4294967295, %s564_s21   ;;  %s374_s23 = sadd.s32 4294967294, %s564_s21   ;;  %s564_s21 = sphi %s609_s21, %s22_s21   ;;  %s560_s20 = sphi %s607_s20, %s727_s20   ;;  %s556_s19 = sphi %s605_s19, %s726_s19   ;;  %s552_s0 = sphi %s603_s0, %s725_s0   ;;  %s548_s18 = sphi %s601_s18, %s724_s18   ;;  %s544_s17 = sphi %s599_s17, %s723_s17  }
  0x14   : > { %s34_s24 = sadd.s32 1, %s560_s20  ;;  %s69_s25 = sadd.s32 1, %s552_s0 }
  0x15   : > { %p36_p5 = scmp.ge.s32.totalorder %s34_s24, 2  ;;  %p79_p6 = scmp.ne.s32.totalorder %s552_s0, %s548_s18 }
  0x16   : > { %p80_p7 = scmp.eq.s32.totalorder %s373_s22, 1  ;;  %p85_p8 = scmp.ne.s32.totalorder %s548_s18, %s544_s17 }
  0x17   : > { %s729_s24 = smov (%p36_p5, %s34_s24), 0  ;;  %p86_p10 = scmp.eq.s32.totalorder %s374_s23, 1 }
  0x18   : > { %p639_p9 = por %p80_p7, %p79_p6  ;;  %s64_s27 = ssub.s32 %s560_s20, %s729_s24 }
  0x19   : > { %p377_p11 = scmp.ge.s32.totalorder %s564_s21, 1  ;;  %p67_p12 = scmp.eq.s32.totalorder %s64_s27, 0 }
  0x1a   : > { %p646_p13 = por %p86_p10, %p85_p8  ;;  %p111_p0 = scmp.lt.s32.totalorder %s564_s21, 3 }
  0x1b   : > { %s652_s29 = scalar_select %p67_p12, %s552_s0, %s69_s25  }
  0x1c   : > { %p112_p1 = pnand %p377_p11, %p111_p0 }
  0x1d   : > { %s127_s30 = sand.u32 (!%p112_p1), 1, %s548_s18   ;;  %s379_s4 = sshll.u32 (!%p112_p1), %s556_s19, 3 }
  0x1e   : > { %115 = sbr.rel (%p112_p1) target bundleno = 81 (0x51), region = 24  ;;  %s658_s5 = sshll.u32 (!%p112_p1), %s127_s30, 3 }
  0x1f   : > { %s129_s6 = scalar_lea.vmem (!%p112_p1), [#allocation6], %s658_s5  ;;  %s566_s7 = smov (!%p112_p1), 0  }
  0x23 LB: >> { %s143_s8 = sadd.s32 %s568_s7, %s379_s4  ;;  %s146_s13 = scalar_lea.vmem [#allocation2], %s568_s7  ;;  %s568_s7 = sphi %s566_s7, %s142_s7  }
  0x24   : >> { %s144_s9 = sld [smem:[#allocation5 + %s143_s8]]  ;;  %s147_s14 = scalar_lea.sflag [#allocation3], %s568_s7 }
  0x2a   : >> { %s145_s12 = scalar_lea.vmem %s718_s1, %s144_s9 }
  0x2b   : >> { %v166_v0 = vld [vmem:[%s145_s12] sm:$0x1] }
  0x2c   : >> { %167 = vst [vmem:[%s146_s13] sm:$0x1] %v166_v0 }
  0x2d   : >> { %193 = vsyncadd %s147_s14, 16  ;;  %s142_s7 = sadd.s32 1, %s568_s7  }
  0x2e   : >> { %p139_p2 = scmp.ge.s32.totalorder %s142_s7, 8  }
  0x2f   : > { %s570_s15 = smov (%p139_p2), 0  }
  0x30   : > { %141 = sbr.rel (!%p139_p2) target bundleno = 35 (0x23), region = 124 }
  0x35 LB: >> { %s200_s16 = scalar_lea.sflag [#allocation3], %s572_s15  ;;  %s572_s15 = sphi %s570_s15, %s199_s15  }
  0x36   : >> { %536 = dma.done.wait %s200_s16, 16 }
  0x37   : >> { %537 = vsyncadd %s200_s16, 4294967280  ;;  %s199_s15 = sadd.s32 1, %s572_s15  }
  0x38   : >> { %p196_p3 = scmp.ge.s32.totalorder %s199_s15, 8  }
  0x39   : > { %v203_v1 = vld [vmem:[#allocation2] sm:$0xff] (%p196_p3)  ;;  %vm206_vm0 = vcmask (%p196_p3), 261120   ;;  %s381_s25 = sshll.u32 (%p196_p3), %s556_s19, 7  ;;  %s223_s8 = sshll.u32 (%p196_p3), %s129_s6, 4  ;;  %s224_s8 = int_to_ptr.vmem [resolvable:$true] %s223_s8 }
  0x3a   : > { %198 = sbr.rel (!%p196_p3) target bundleno = 53 (0x35), region = 135  ;;  %v204_v2 = vld [vmem:[%s719_s2] sm:$0xff] (%p196_p3)  ;;  %s671_s7 = scalar_lea.hbm (%p196_p3), %s720_s3, %s381_s25 }
  0x3b   : > { %v205_v3 = vadd.f32 (%p196_p3), %v204_v2, %v203_v1  ;;  %s209_s9 = scalar_lea.sflag (%p196_p3), [#allocation7], %s127_s30  ;;  %s476_s10 = scalar_lea.vmem (%p196_p3), %s224_s8, 128 }
  0x3c   : > { %p477_p4 = scmp.ne.s32.totalorder (%p196_p3), %s224_s8, %s476_s10  ;;  %s575_s11 = smov (%p196_p3), [#allocation6]  }
  0x3d   : > { %207 = vst.msk [vmem:[%s129_s6] sm:$0xff] (%p196_p3), %vm206_vm0, %v205_v3  ;;  %s480_s19 = sshll.u32 (%p196_p3), %s575_s11, 4  ;;  %s481_s19 = int_to_ptr.vmem [resolvable:$false] %s480_s19 }
  0x3e   : > { %p478_p5 = pnand (%p196_p3), %p477_p4, %p639_p9  ;;  %s482_s12 = scalar_lea.vmem (%p196_p3), %s481_s19, 256 }
  0x3f   : > { %p483_p7 = scmp.lt.s32.totalorder %s224_s8, %s481_s19  ;;  %p484_p8 = scmp.lt.s32.totalorder %s482_s12, %s476_s10 }
  0x40   : > { %p479_p6 = pneg %p478_p5 }
  0x41   : > { %p485_p10 = por %p484_p8, %p483_p7 }
  0x43   : > { %p486_p11 = pnand %p485_p10, %p479_p6 }
  0x45   : > { %489 = shalt.err (!%p486_p11)
}
  0x46   : > { %s490_s5 = scalar_lea.hbm %s671_s7, 128  ;;  %s494_s13 = scalar_lea.hbm %s720_s3, 256 }
  0x47   : > { %p491_p12 = scmp.ne.s32.totalorder %s671_s7, %s490_s5  ;;  %p495_p2 = scmp.lt.s32.totalorder %s671_s7, %s720_s3 }
  0x48   : > { %p496_p3 = scmp.lt.s32.totalorder %s494_s13, %s490_s5 }
  0x49   : > { %p492_p0 = pnand %p491_p12, %p639_p9 }
  0x4a   : > { %p497_p4 = por %p496_p3, %p495_p2 }
  0x4b   : > { %p493_p1 = pneg %p492_p0 }
  0x4d   : > { %p498_p5 = pnand %p497_p4, %p493_p1 }
  0x4f   : > { %501 = shalt.err (!%p498_p5)
}
  0x50   : > { %392 = dma.vmem_to_hbm [thread:$0]  (%p639_p9), %s224_s8, 128, %s671_s7, %s209_s9  }
  0x51 PF: > { %p398_p6 = scmp.ge.s32.totalorder %s564_s21, 2  ;;  %s235_s16 = sand.u32 1, %s544_s17  }
  0x52   : > { %s236_s22 = scalar_lea.sflag [#allocation7], %s235_s16 }
  0x53   : > { %p395_p7 = pnand %p398_p6, %p646_p13 }
  0x55   : > { %p396_p8 = pneg %p395_p7 }
  0x57   : > { %539 = dma.done.wait (%p396_p8), %s236_s22, 128  }
  0x58   : > { %541 = vsyncadd (%p396_p8), %s236_s22, 4294967168  ;;  %s22_s21 = sadd.s32 1, %s564_s21   ;;  %s723_s17 = smov %s548_s18 }
  0x59   : > { %p19_p10 = scmp.ge.s32.totalorder %s22_s21, 4   ;;  %s724_s18 = smov %s552_s0 }
  0x5a   : > { %s725_s0 = smov %s652_s29  ;;  %s726_s19 = smov %s560_s20 }
  0x5b   : > { %s727_s20 = smov %s729_s24  ;;  %21 = sbr.rel (!%p19_p10) target bundleno = 19 (0x13), region = 146 }
  0x60   :  { %241 = vsyncpa [#allocation7], 1 }
  0x61   :  { %243 = vsyncpa [#allocation7 + $0x1], 1 }
  0x62   :  { %244 = vsyncmov [#allocation3] }
  0x65   :  { %s245_s26 = vpop.sfrf %244 }
  0x66   :  { %p384_p9 = scmp.ne.s32.totalorder %s245_s26, 0 }
  0x68   :  { %249 = shalt.err (%p384_p9)  }
  0x69   :  { %251 = vsyncmov [#allocation3 + $0x1] }
  0x6c   :  { %s252_s28 = vpop.sfrf %251 }
  0x6d   :  { %p385_p13 = scmp.ne.s32.totalorder %s252_s28, 0 }
  0x6f   :  { %256 = shalt.err (%p385_p13)  }
  0x70   :  { %258 = vsyncmov [#allocation3 + $0x2] }
  0x73   :  { %s259_s23 = vpop.sfrf %258 }
  0x74   :  { %p386_p11 = scmp.ne.s32.totalorder %s259_s23, 0 }
  0x76   :  { %263 = shalt.err (%p386_p11)  }
  0x77   :  { %265 = vsyncmov [#allocation3 + $0x3] }
  0x7a   :  { %s266_s29 = vpop.sfrf %265 }
  0x7b   :  { %p387_p12 = scmp.ne.s32.totalorder %s266_s29, 0 }
  0x7d   :  { %270 = shalt.err (%p387_p12)  }
  0x7e   :  { %272 = vsyncmov [#allocation3 + $0x4] }
  0x81   :  { %s273_s21 = vpop.sfrf %272 }
  0x82   :  { %p388_p0 = scmp.ne.s32.totalorder %s273_s21, 0 }
  0x84   :  { %277 = shalt.err (%p388_p0)  }
  0x85   :  { %279 = vsyncmov [#allocation3 + $0x5] }
  0x88   :  { %s280_s1 = vpop.sfrf %279 }
  0x89   :  { %p389_p1 = scmp.ne.s32.totalorder %s280_s1, 0 }
  0x8b   :  { %284 = shalt.err (%p389_p1)  }
  0x8c   :  { %286 = vsyncmov [#allocation3 + $0x6] }
  0x8f   :  { %s287_s2 = vpop.sfrf %286 }
  0x90   :  { %p390_p2 = scmp.ne.s32.totalorder %s287_s2, 0 }
  0x92   :  { %291 = shalt.err (%p390_p2)  }
  0x93   :  { %293 = vsyncmov [#allocation3 + $0x7] }
  0x96   :  { %s294_s3 = vpop.sfrf %293 }
  0x97   :  { %p391_p3 = scmp.ne.s32.totalorder %s294_s3, 0 }
  0x99   :  { %298 = shalt.err (%p391_p3)  }

</bundles_post_ra>
